<compile_context>
chip_gen: v6e
topology: v6e:2x2x1
jax: 0.10.0
libtpu: 0.0.40
codegen_flags: <defaults>
</compile_context>

<pallas_src>
import jax
import jax.numpy as jnp
from jax.experimental import pallas as pl
from jax.experimental.pallas import tpu as pltpu


# ---------------------------------------------------------------------------
# Tiling helpers.
# ---------------------------------------------------------------------------
def _round_up(v, m):
    return ((v + m - 1) // m) * m


def _tn_cap(hidden_dim):
    """Lane-tile cap: bound the VMEM spill of the two [H, TN] f32 activations
    (~H*TN*4 bytes each). Spilling is acceptable here (vld/vst slots are idle),
    but don't let it balloon. H=32 -> 2048 lanes."""
    cap = (64 * 1024) // max(int(hidden_dim), 1)          # H * TN <= 64K elems
    return max(128, min(4096, (cap // 128) * 128))


def _pick_tn(np_cols, hidden_dim):
    """Largest lane tile (multiple of 128) that divides np_cols, is <= cap,
    and yields >= 2 grid steps when possible (so v7x's two TensorCores both
    get work via the "parallel" grid axis)."""
    assert np_cols % 128 == 0, np_cols
    cap = _tn_cap(hidden_dim)
    cands = [k for k in range(128, min(cap, np_cols) + 1, 128)
             if np_cols % k == 0 and np_cols // k >= 2]
    return max(cands) if cands else min(np_cols, cap)


# ---------------------------------------------------------------------------
# Kernel.
# ---------------------------------------------------------------------------
def odefunc_kernel(x_ref, w1c0_ref, w1c1_ref, b1_ref, w2_ref, b2_ref,
                   w3_ref, b3_ref, o_ref):
    # Per-row loads straight from the ref (address-offset loads, lane-dense).
    x0 = x_ref[0:1, :]                                     # [1, TN]
    x1 = x_ref[1:2, :]                                     # [1, TN]

    # r = sqrt(x0^2 + x1^2) is computed in the torch module but never used.

    # Layer 1 (in=2): VPU outer product; an MXU dot would waste 254/256 of the
    # contraction depth and add an MXU push + result-FIFO pop to the chain.
    h1 = jnp.tanh(w1c0_ref[...] * x0 + w1c1_ref[...] * x1
                  + b1_ref[...])                           # [H, TN]

    # Layer 2 (H x H): the only real MXU work.
    # (For bit-closeness to torch inside long integrations, switch the dots to
    #  precision=jax.lax.Precision.HIGHEST; default passes 1e-4 here.)
    h2 = jnp.tanh(jnp.dot(w2_ref[...], h1,
                          preferred_element_type=jnp.float32)
                  + b2_ref[...])                           # [H, TN]

    # Layer 3 ([2,H] @ [H,TN]): a single MXU push; only 2 output rows used,
    # but that is a latency cost, not throughput, so it stays on the MXU.
    dyn = jnp.dot(w3_ref[...], h2,
                  preferred_element_type=jnp.float32) + b3_ref[...]   # [2, TN]

    # Rotation epilogue: write dyn, then adjust each output row in place.
    #   out[0,:] = dyn[0,:] - 0.5 * x[1,:] ; out[1,:] = dyn[1,:] + 0.5 * x[0,:]
    # Re-reading the rows from VMEM keeps every elementwise operand at sublane
    # offset 0 — no sublane concat/roll/relayout — and the extra (2,TN) VMEM
    # round trip rides on idle vld/vst slots.
    o_ref[...] = dyn.astype(o_ref.dtype)
    o_ref[0:1, :] = o_ref[0:1, :] - 0.5 * x1
    o_ref[1:2, :] = o_ref[1:2, :] + 0.5 * x0


# ---------------------------------------------------------------------------
# Transposed-layout entry point (preferred inside an integrator loop).
# ---------------------------------------------------------------------------
def odefunc_forward_t(t, xt, params):
    """Derivative evaluation in the transposed, lane-dense state layout.

    xt: [2, Np] float32 with Np a multiple of 128 (pad columns are computed but
    carry no meaning). Returns d(xt)/dt as [2, Np] in the same layout. An ODE
    integrator should keep its state in this layout so each RHS evaluation is a
    single pallas_call with no transpose/pad HBM round trips.
    """
    del t  # The torch forward ignores t.
    w1, b1, w2, b2, w3, b3 = params
    H = w1.shape[0]
    two, Np = xt.shape
    assert two == 2 and Np % 128 == 0, xt.shape

    TN = _pick_tn(Np, H)
    grid = (Np // TN,)

    # Split the two w1 columns here (256 bytes, once per call) so the kernel's
    # layer-1 FMAs use the same (H,1) lane-broadcast pattern as the biases.
    w1c0 = w1[:, 0:1]
    w1c1 = w1[:, 1:2]

    const = lambda shape: pl.BlockSpec(shape, lambda i: (0, 0))

    return pl.pallas_call(
        odefunc_kernel,
        out_shape=jax.ShapeDtypeStruct((2, Np), jnp.float32),
        grid=grid,
        in_specs=[
            pl.BlockSpec((2, TN), lambda i: (0, i)),   # x tile (lane-dense)
            const((H, 1)),                             # w1[:, 0]
            const((H, 1)),                             # w1[:, 1]
            const((H, 1)),                             # b1
            const((H, H)),                             # w2  (VMEM-resident)
            const((H, 1)),                             # b2
            const((2, H)),                             # w3
            const((2, 1)),                             # b3
        ],
        out_specs=pl.BlockSpec((2, TN), lambda i: (0, i)),
        compiler_params=pltpu.CompilerParams(
            dimension_semantics=("parallel",)),        # v7x: 2 TCs split batch
    )(xt, w1c0, w1c1, b1, w2, b2, w3, b3)


# ---------------------------------------------------------------------------
# Boundary helpers + torch-layout convenience wrapper.
# ---------------------------------------------------------------------------
def pad_cols(n):
    """Padded lane count the transposed state uses for batch size n."""
    return _round_up(max(int(n), 1), 128)


def to_transposed_state(x):
    """[N, 2] torch layout -> [2, Np] lane-dense layout (do this ONCE, outside
    the integrator loop)."""
    n = x.shape[0]
    return jnp.zeros((2, pad_cols(n)), jnp.float32).at[:, :n].set(x.T)


def from_transposed_state(xt, n):
    return xt[:, :n].T


def odefunc_forward(t, x, params):
    """Torch-layout wrapper: x [N, 2] -> dx/dt [N, 2].

    Pays one transpose/pad in and one slice/transpose out; inside an integrator
    loop keep the state transposed and call `odefunc_forward_t` directly.
    """
    n = x.shape[0]
    return from_transposed_state(
        odefunc_forward_t(t, to_transposed_state(x), params), n)


# ---------------------------------------------------------------------------
# Parameters + pure-JAX reference.
# ---------------------------------------------------------------------------
def init_params(hidden_dim, key):
    """Deterministic synthetic init matching the torch module's shapes.

    torch Linear(in, out): weight [out, in], bias [out]. Weights are kept in
    torch orientation; biases are stored as [out, 1] so they broadcast over the
    lane (batch) axis. Last-layer bias is 0.1 (`self.net[-1].bias.data.fill_`).
    """
    k1, k2, k3, k4, k5 = jax.random.split(key, 5)
    w1 = 0.3 * jax.random.normal(k1, (hidden_dim, 2), jnp.float32)
    b1 = 0.1 * jax.random.normal(k2, (hidden_dim, 1), jnp.float32)
    w2 = 0.3 * jax.random.normal(k3, (hidden_dim, hidden_dim), jnp.float32)
    b2 = 0.1 * jax.random.normal(k4, (hidden_dim, 1), jnp.float32)
    w3 = 0.3 * jax.random.normal(k5, (2, hidden_dim), jnp.float32)
    b3 = jnp.full((2, 1), 0.1, jnp.float32)
    return (w1, b1, w2, b2, w3, b3)


def odefunc_ref(t, x, params):
    """Pure-JAX reference (torch layout) for correctness checking."""
    del t
    w1, b1, w2, b2, w3, b3 = params
    h1 = jnp.tanh(x @ w1.T + b1[:, 0])
    h2 = jnp.tanh(h1 @ w2.T + b2[:, 0])
    dyn = h2 @ w3.T + b3[:, 0]
    dyn = dyn.at[:, 0].add(-0.5 * x[:, 1])
    dyn = dyn.at[:, 1].add(0.5 * x[:, 0])
    return dyn


if __name__ == "__main__":
    key = jax.random.PRNGKey(0)
    kx, kp, kx2 = jax.random.split(key, 3)

    HIDDEN = 32
    params = init_params(HIDDEN, kp)
    t = jnp.float32(0.0)

    # Small case (typical module usage): Np=128, grid=(1,).
    N = 8
    x = jax.random.normal(kx, (N, 2), jnp.float32)
    out = jax.block_until_ready(odefunc_forward(t, x, params))
    ref = odefunc_ref(t, x, params)
    assert out.shape == (N, 2) and out.dtype == jnp.float32
    assert jnp.allclose(out, ref, atol=1e-4, rtol=1e-4), (out, ref)

    # Larger batch exercising the multi-step parallel grid (Np=1024, TN=512,
    # grid=(2,)) through the transposed-state path an integrator would use.
    N2 = 1000
    x2 = jax.random.normal(kx2, (N2, 2), jnp.float32)
    xt2 = to_transposed_state(x2)
    out_t2 = jax.block_until_ready(odefunc_forward_t(t, xt2, params))
    out2 = from_transposed_state(out_t2, N2)
    ref2 = odefunc_ref(t, x2, params)
    assert out2.shape == (N2, 2) and out2.dtype == jnp.float32
    assert jnp.allclose(out2, ref2, atol=1e-4, rtol=1e-4), (out2, ref2)

    print("KERNEL_OK")
</pallas_src>

<mosaic_0001>
module attributes {stable_mosaic.version = 11 : i64} {
  func.func @odefunc_kernel(%arg0: i32, %arg1: memref<2x128xf32, #tpu.memory_space<vmem>>, %arg2: memref<32x1xf32, #tpu.memory_space<vmem>>, %arg3: memref<32x1xf32, #tpu.memory_space<vmem>>, %arg4: memref<32x1xf32, #tpu.memory_space<vmem>>, %arg5: memref<32x32xf32, #tpu.memory_space<vmem>>, %arg6: memref<32x1xf32, #tpu.memory_space<vmem>>, %arg7: memref<2x32xf32, #tpu.memory_space<vmem>>, %arg8: memref<2x1xf32, #tpu.memory_space<vmem>>, %arg9: memref<2x128xf32, #tpu.memory_space<vmem>>) attributes {dimension_semantics = [#tpu.dimension_semantics<parallel>], iteration_bounds = array<i64: 1>, scalar_prefetch = 0 : i64, scratch_operands = 0 : i64, tpu.core_type = #tpu.core_type<tc>, window_params = [{transform_indices = @transform_0, window_bounds = array<i64: 2, 128>}, {pipeline_mode = #tpu.pipeline_mode<synchronous>, transform_indices = @transform_1, window_bounds = array<i64: 32, 1>}, {pipeline_mode = #tpu.pipeline_mode<synchronous>, transform_indices = @transform_2, window_bounds = array<i64: 32, 1>}, {pipeline_mode = #tpu.pipeline_mode<synchronous>, transform_indices = @transform_3, window_bounds = array<i64: 32, 1>}, {pipeline_mode = #tpu.pipeline_mode<synchronous>, transform_indices = @transform_4, window_bounds = array<i64: 32, 32>}, {pipeline_mode = #tpu.pipeline_mode<synchronous>, transform_indices = @transform_5, window_bounds = array<i64: 32, 1>}, {pipeline_mode = #tpu.pipeline_mode<synchronous>, transform_indices = @transform_6, window_bounds = array<i64: 2, 32>}, {pipeline_mode = #tpu.pipeline_mode<synchronous>, transform_indices = @transform_7, window_bounds = array<i64: 2, 1>}, {transform_indices = @transform_8, window_bounds = array<i64: 2, 128>}]} {
    %c0 = arith.constant 0 : index
    %c0_0 = arith.constant 0 : index
    %0 = vector.load %arg1[%c0, %c0_0] : memref<2x128xf32, #tpu.memory_space<vmem>>, vector<1x128xf32>
    %c1 = arith.constant 1 : index
    %c0_1 = arith.constant 0 : index
    %1 = vector.load %arg1[%c1, %c0_1] : memref<2x128xf32, #tpu.memory_space<vmem>>, vector<1x128xf32>
    %c0_2 = arith.constant 0 : index
    %c0_3 = arith.constant 0 : index
    %2 = vector.load %arg2[%c0_2, %c0_3] : memref<32x1xf32, #tpu.memory_space<vmem>>, vector<32x1xf32>
    %3 = vector.broadcast %2 : vector<32x1xf32> to vector<32x128xf32>
    %4 = vector.broadcast %0 : vector<1x128xf32> to vector<32x128xf32>
    %5 = arith.mulf %3, %4 : vector<32x128xf32>
    %c0_4 = arith.constant 0 : index
    %c0_5 = arith.constant 0 : index
    %6 = vector.load %arg3[%c0_4, %c0_5] : memref<32x1xf32, #tpu.memory_space<vmem>>, vector<32x1xf32>
    %7 = vector.broadcast %6 : vector<32x1xf32> to vector<32x128xf32>
    %8 = vector.broadcast %1 : vector<1x128xf32> to vector<32x128xf32>
    %9 = arith.mulf %7, %8 : vector<32x128xf32>
    %10 = arith.addf %5, %9 : vector<32x128xf32>
    %c0_6 = arith.constant 0 : index
    %c0_7 = arith.constant 0 : index
    %11 = vector.load %arg4[%c0_6, %c0_7] : memref<32x1xf32, #tpu.memory_space<vmem>>, vector<32x1xf32>
    %12 = vector.broadcast %11 : vector<32x1xf32> to vector<32x128xf32>
    %13 = arith.addf %10, %12 : vector<32x128xf32>
    %14 = math.tanh %13 : vector<32x128xf32>
    %c0_8 = arith.constant 0 : index
    %c0_9 = arith.constant 0 : index
    %15 = vector.load %arg5[%c0_8, %c0_9] : memref<32x32xf32, #tpu.memory_space<vmem>>, vector<32x32xf32>
    %cst = arith.constant dense<0.000000e+00> : vector<32x128xf32>
    %16 = tpu.matmul %15, %14, %cst {dimension_numbers = #tpu.dot_dimension_numbers<[1], [0], [0], [1], [0, 0, 1, 1], [], []>} : vector<32x32xf32>, vector<32x128xf32>, vector<32x128xf32> -> vector<32x128xf32>
    %c0_10 = arith.constant 0 : index
    %c0_11 = arith.constant 0 : index
    %17 = vector.load %arg6[%c0_10, %c0_11] : memref<32x1xf32, #tpu.memory_space<vmem>>, vector<32x1xf32>
    %18 = vector.broadcast %17 : vector<32x1xf32> to vector<32x128xf32>
    %19 = arith.addf %16, %18 : vector<32x128xf32>
    %20 = math.tanh %19 : vector<32x128xf32>
    %c0_12 = arith.constant 0 : index
    %c0_13 = arith.constant 0 : index
    %21 = vector.load %arg7[%c0_12, %c0_13] : memref<2x32xf32, #tpu.memory_space<vmem>>, vector<2x32xf32>
    %cst_14 = arith.constant dense<0.000000e+00> : vector<2x128xf32>
    %22 = tpu.matmul %21, %20, %cst_14 {dimension_numbers = #tpu.dot_dimension_numbers<[1], [0], [0], [1], [0, 0, 1, 1], [], []>} : vector<2x32xf32>, vector<32x128xf32>, vector<2x128xf32> -> vector<2x128xf32>
    %c0_15 = arith.constant 0 : index
    %c0_16 = arith.constant 0 : index
    %23 = vector.load %arg8[%c0_15, %c0_16] : memref<2x1xf32, #tpu.memory_space<vmem>>, vector<2x1xf32>
    %24 = vector.broadcast %23 : vector<2x1xf32> to vector<2x128xf32>
    %25 = arith.addf %22, %24 : vector<2x128xf32>
    %c0_17 = arith.constant 0 : index
    %c0_18 = arith.constant 0 : index
    %26 = vector.load %arg9[%c0_17, %c0_18] : memref<2x128xf32, #tpu.memory_space<vmem>>, vector<2x128xf32>
    tpu.vector_store %arg9[%c0_17, %c0_18], %25 {strides = array<i32>} : memref<2x128xf32, #tpu.memory_space<vmem>>, vector<2x128xf32>,
    %c0_19 = arith.constant 0 : index
    %c0_20 = arith.constant 0 : index
    %27 = vector.load %arg9[%c0_19, %c0_20] : memref<2x128xf32, #tpu.memory_space<vmem>>, vector<1x128xf32>
    %cst_21 = arith.constant 5.000000e-01 : f32
    %28 = vector.broadcast %cst_21 : f32 to vector<1x128xf32>
    %29 = arith.mulf %28, %1 : vector<1x128xf32>
    %30 = arith.subf %27, %29 : vector<1x128xf32>
    %c0_22 = arith.constant 0 : index
    %c0_23 = arith.constant 0 : index
    %31 = vector.load %arg9[%c0_22, %c0_23] : memref<2x128xf32, #tpu.memory_space<vmem>>, vector<1x128xf32>
    tpu.vector_store %arg9[%c0_22, %c0_23], %30 {strides = array<i32>} : memref<2x128xf32, #tpu.memory_space<vmem>>, vector<1x128xf32>,
    %c1_24 = arith.constant 1 : index
    %c0_25 = arith.constant 0 : index
    %32 = vector.load %arg9[%c1_24, %c0_25] : memref<2x128xf32, #tpu.memory_space<vmem>>, vector<1x128xf32>
    %cst_26 = arith.constant 5.000000e-01 : f32
    %33 = vector.broadcast %cst_26 : f32 to vector<1x128xf32>
    %34 = arith.mulf %33, %0 : vector<1x128xf32>
    %35 = arith.addf %32, %34 : vector<1x128xf32>
    %c1_27 = arith.constant 1 : index
    %c0_28 = arith.constant 0 : index
    %36 = vector.load %arg9[%c1_27, %c0_28] : memref<2x128xf32, #tpu.memory_space<vmem>>, vector<1x128xf32>
    tpu.vector_store %arg9[%c1_27, %c0_28], %35 {strides = array<i32>} : memref<2x128xf32, #tpu.memory_space<vmem>>, vector<1x128xf32>,
    return
  }
  func.func @transform_0(%arg0: i32) -> (i32, i32) {
    %c0_i32 = arith.constant 0 : i32
    %c0_i32_0 = arith.constant 0 : i32
    return %c0_i32, %arg0 : i32, i32
  }
  func.func @transform_1(%arg0: i32) -> (i32, i32) {
    %c0_i32 = arith.constant 0 : i32
    %c0_i32_0 = arith.constant 0 : i32
    %c0_i32_1 = arith.constant 0 : i32
    return %c0_i32, %c0_i32_0 : i32, i32
  }
  func.func @transform_2(%arg0: i32) -> (i32, i32) {
    %c0_i32 = arith.constant 0 : i32
    %c0_i32_0 = arith.constant 0 : i32
    %c0_i32_1 = arith.constant 0 : i32
    return %c0_i32, %c0_i32_0 : i32, i32
  }
  func.func @transform_3(%arg0: i32) -> (i32, i32) {
    %c0_i32 = arith.constant 0 : i32
    %c0_i32_0 = arith.constant 0 : i32
    %c0_i32_1 = arith.constant 0 : i32
    return %c0_i32, %c0_i32_0 : i32, i32
  }
  func.func @transform_4(%arg0: i32) -> (i32, i32) {
    %c0_i32 = arith.constant 0 : i32
    %c0_i32_0 = arith.constant 0 : i32
    %c0_i32_1 = arith.constant 0 : i32
    return %c0_i32, %c0_i32_0 : i32, i32
  }
  func.func @transform_5(%arg0: i32) -> (i32, i32) {
    %c0_i32 = arith.constant 0 : i32
    %c0_i32_0 = arith.constant 0 : i32
    %c0_i32_1 = arith.constant 0 : i32
    return %c0_i32, %c0_i32_0 : i32, i32
  }
  func.func @transform_6(%arg0: i32) -> (i32, i32) {
    %c0_i32 = arith.constant 0 : i32
    %c0_i32_0 = arith.constant 0 : i32
    %c0_i32_1 = arith.constant 0 : i32
    return %c0_i32, %c0_i32_0 : i32, i32
  }
  func.func @transform_7(%arg0: i32) -> (i32, i32) {
    %c0_i32 = arith.constant 0 : i32
    %c0_i32_0 = arith.constant 0 : i32
    %c0_i32_1 = arith.constant 0 : i32
    return %c0_i32, %c0_i32_0 : i32, i32
  }
  func.func @transform_8(%arg0: i32) -> (i32, i32) {
    %c0_i32 = arith.constant 0 : i32
    %c0_i32_0 = arith.constant 0 : i32
    return %c0_i32, %arg0 : i32, i32
  }
}

</mosaic_0001>

<bundles_post_ra>
// kernel: tpu_custom_call.1
= control target key start
LH: loop header
LB: loop body
LE: loop exit
PB: predicated region body
PF: predicated region fallthrough
CT: control target
= control target key end

     0   :  { %v452_v2 = vmov 0   ;;  %s589_s0 = inlined_call_operand.vmem [shape: f32[2,128], index: 0, kind: input, shape index: {}]   ;;  %s590_s1 = inlined_call_operand.vmem [shape: f32[32,1], index: 1, kind: input, shape index: {}]   ;;  %s591_s2 = inlined_call_operand.vmem [shape: f32[32,1], index: 2, kind: input, shape index: {}]   ;;  %s592_s3 = inlined_call_operand.vmem [shape: f32[32,1], index: 3, kind: input, shape index: {}]   ;;  %s593_s4 = inlined_call_operand.vmem [shape: f32[32,32], index: 4, kind: input, shape index: {}]   ;;  %s594_s5 = inlined_call_operand.vmem [shape: f32[32,1], index: 5, kind: input, shape index: {}]   ;;  %s595_s6 = inlined_call_operand.vmem [shape: f32[2,32], index: 6, kind: input, shape index: {}]   ;;  %s596_s7 = inlined_call_operand.vmem [shape: f32[2,1], index: 7, kind: input, shape index: {}]   ;;  %s597_s8 = inlined_call_operand.hbm [shape: f32[2,128], index: 8, kind: output, shape index: {}]  }
   0x1   :  { %v35_v0 = vld [vmem:[%s590_s1 + $0x18] sm:$0xff]  ;;  %v34_v1 = vld [vmem:[%s590_s1 + $0x10] sm:$0xff]  ;;  %413 = vset.pattern.permute.xlu1 %v452_v2  ;;  %412 = vset.pattern.permute.xlu0 %v452_v2 }
   0x2   :  { %53 = vperm.xlu0 %412, %v35_v0   ;;  %48 = vperm.xlu1 %413, %v34_v1   ;;  %v67_v3 = vld [vmem:[%s591_s2 + $0x18] sm:$0xff]  ;;  %v66_v4 = vld [vmem:[%s591_s2 + $0x10] sm:$0xff] }
   0x6   :  { %85 = vperm.xlu0 %412, %v67_v3   ;;  %80 = vperm.xlu1 %413, %v66_v4  }
   0x7   :  { %13 = vsyncpa [#allocation3], 0  ;;  %v65_v5 = vld [vmem:[%s591_s2 + $0x8] sm:$0xff]  ;;  %v103_v7 = vld [vmem:[%s592_s3 + $0x18] sm:$0xff]  ;;  %vm160_vm0 = vcmask 261120   ;;  %v56_v19 = vlaneseq  ;;  %v453_v61 = vmov 0.0  }
   0x8   :  { %v33_v6 = vld [vmem:[%s590_s1 + $0x8] sm:$0xff]  ;;  %v32_v8 = vld [vmem:[%s590_s1] sm:$0xff]  ;;  %v102_v10 = vld [vmem:[%s592_s3 + $0x10] sm:$0xff]  ;;  %397 = vmatprep.subr.mxu1 %v453_v61  ;;  %vm454_vm1 = vmmov 0   ;;  %s455_s24 = smov [#allocation2]  }
   0x9   :  { %v64_v9 = vld [vmem:[%s591_s2] sm:$0xff]  ;;  %v101_v11 = vld [vmem:[%s592_s3 + $0x8] sm:$0xff]  ;;  %v139_v13 = vld [vmem:[%s594_s5 + $0x18] sm:$0xff]  ;;  %v57_v20 = vshrl.u32 %v56_v19, 7  ;;  %405 = vmatprep.mubr.msk.f32.mxu1 %vm454_vm1, %v453_v61  ;;  %s357_s25 = sshll.u32 %s455_s24, 4  ;;  %s358_s25 = int_to_ptr.vmem [resolvable:$true] %s357_s25 }
   0xa   :  { %75 = vperm.xlu1 %413, %v65_v5   ;;  %43 = vperm.xlu0 %412, %v33_v6   ;;  %v100_v12 = vld [vmem:[%s592_s3] sm:$0xff]  ;;  %v138_v14 = vld [vmem:[%s594_s5 + $0x10] sm:$0xff]  ;;  %v137_v15 = vld [vmem:[%s594_s5 + $0x8] sm:$0xff]  ;;  %p435_p1 = scmp.lt.s32.totalorder %s358_s25, %s358_s25 }
   0xb   :  { %v136_v16 = vld [vmem:[%s594_s5] sm:$0xff]  ;;  %v58_v24 = vsub.s32 0, %v57_v20  ;;  %v133_v58 = vld [vmem:[%s593_s4 + $0x8] sm:$0xff]  ;;  %v134_v59 = vld [vmem:[%s593_s4 + $0x10] sm:$0xff] }
   0xc   :  { %v263_v17 = vld [vmem:[%s596_s7] sm:$0x3]  ;;  %v135_v60 = vld [vmem:[%s593_s4 + $0x18] sm:$0xff] }
   0xd   :  { %v132_v18 = vld [vmem:[%s593_s4] sm:$0xff] }
   0xe   :  { %121 = vperm.xlu0 %412, %v103_v7   ;;  %38 = vperm.xlu1 %413, %v32_v8   ;;  %v559_v23 = vld [vmem:[%s589_s0 + $0x1] sm:$0x1]  ;;  %v564_v25 = vld [vmem:[%s589_s0] sm:$0x1] }
   0xf   :  { %391 = vmatprep.mubr.msk.f32.mxu0 %vm160_vm0, %v132_v18  ;;  %v91_v26 = vrot.slane %v559_v23, %v58_v24  ;;  %v59_v29 = vrot.slane %v564_v25, %v58_v24  ;;  %v344_v19 = vmul.f32 0.5, %v559_v23  ;;  %v348_v20 = vmul.f32 0.5, %v564_v25 }
  0x12   :  { %70 = vperm.xlu0 %412, %v64_v9   ;;  %116 = vperm.xlu1 %413, %v102_v10  }
  0x16   :  { %111 = vperm.xlu0 %412, %v101_v11   ;;  %106 = vperm.xlu1 %413, %v100_v12  }
  0x1a   :  { %157 = vperm.xlu0 %412, %v139_v13   ;;  %152 = vperm.xlu1 %413, %v138_v14   ;;  %v262_v13 = vld [vmem:[%s595_s6] sm:$0x3]  ;;  %s430_s6 = scalar_lea.vmem %s358_s25, 32 }
  0x1b   :  { %p431_p0 = scmp.ne.s32.totalorder %s358_s25, %s430_s6  ;;  %p436_p2 = scmp.lt.s32.totalorder %s430_s6, %s430_s6 }
  0x1d   :  { %p437_p3 = por %p436_p2, %p435_p1 }
  0x1e   :  { %147 = vperm.xlu0 %412, %v137_v15   ;;  %142 = vperm.xlu1 %413, %v136_v16  }
  0x1f   :  { %p438_p4 = pnand %p437_p3, %p431_p0 }
  0x22   :  { %266 = vperm.xlu0 %412, %v263_v17  }
  0x7d   :  { %v54_v21 = vpop.permute.xlu0 %53  ;;  %v49_v22 = vpop.permute.xlu1 %48 }
  0x7e   :  { %v63_v33 = vmul.f32 %v59_v29, %v54_v21  ;;  %v62_v38 = vmul.f32 %v59_v29, %v49_v22 }
  0x81   :  { %v86_v27 = vpop.permute.xlu0 %85  ;;  %v81_v28 = vpop.permute.xlu1 %80 }
  0x82   :  { %v95_v30 = vmul.f32 %v91_v26, %v86_v27  ;;  %v94_v34 = vmul.f32 %v91_v26, %v81_v28 }
  0x84   :  { %v99_v35 = vadd.f32 %v95_v30, %v63_v33  ;;  %v98_v42 = vadd.f32 %v94_v34, %v62_v38 }
  0x85   :  { %v76_v31 = vpop.permute.xlu1 %75  ;;  %v44_v32 = vpop.permute.xlu0 %43 }
  0x86   :  { %v93_v40 = vmul.f32 %v91_v26, %v76_v31  ;;  %v61_v41 = vmul.f32 %v59_v29, %v44_v32 }
  0x88   :  { %v97_v48 = vadd.f32 %v93_v40, %v61_v41 }
  0x89   :  { %v122_v36 = vpop.permute.xlu0 %121  ;;  %v39_v37 = vpop.permute.xlu1 %38 }
  0x8a   :  { %v127_v39 = vadd.f32 %v122_v36, %v99_v35  ;;  %v60_v45 = vmul.f32 %v59_v29, %v39_v37 }
  0x8c   :  { %414 = vtanh.f32 %v127_v39 }
  0x8d   :  { %v71_v43 = vpop.permute.xlu0 %70  ;;  %v117_v44 = vpop.permute.xlu1 %116 }
  0x8e   :  { %v92_v46 = vmul.f32 %v91_v26, %v71_v43  ;;  %v126_v47 = vadd.f32 %v117_v44, %v98_v42 }
  0x90   :  { %416 = vtanh.f32 %v126_v47  ;;  %v96_v49 = vadd.f32 %v92_v46, %v60_v45 }
  0x91   :  { %v112_v50 = vpop.permute.xlu0 %111  ;;  %v107_v51 = vpop.permute.xlu1 %106 }
  0x92   :  { %v125_v52 = vadd.f32 %v112_v50, %v97_v48  ;;  %v124_v53 = vadd.f32 %v107_v51, %v96_v49 }
  0x94   :  { %418 = vtanh.f32 %v125_v52 }
  0x95   :  { %420 = vtanh.f32 %v124_v53  ;;  %v158_v62 = vpop.permute.xlu0 %157  ;;  %v153_v0 = vpop.permute.xlu1 %152 }
  0x99   :  { %v415_v54 = vpop.eup %414  ;;  %v148_v4 = vpop.permute.xlu0 %147 }
  0x9a   :  { %383 = vmatprep.subr.mxu0 %v415_v54  ;;  %v143_v8 = vpop.permute.xlu1 %142 }
  0x9b   :  { %384 = vmatpush3.msra.mxu0 %v415_v54 }
  0x9d   :  { %v417_v55 = vpop.eup %416  ;;  %v267_v15 = vpop.permute.xlu0 %266 }
  0x9e   :  { %385 = vmatprep.subr.mxu0 %v417_v55 }
  0x9f   :  { %386 = vmatpush3.msra.mxu0 %v417_v55 }
  0xa1   :  { %v419_v56 = vpop.eup %418 }
  0xa2   :  { %387 = vmatprep.subr.mxu0 %v419_v56  ;;  %v421_v57 = vpop.eup %420 }
  0xa3   :  { %388 = vmatpush3.msra.mxu0 %v419_v56 }
  0xa4   :  { %389 = vmatprep.subr.mxu0 %v421_v57 }
  0xa5   :  { %390 = vmatpush3.msra.mxu0 %v421_v57 }
  0xa6   :  { %392 = vmatmul.mubr.msk.f32.vlgmr.msra.gmra.mxu0 %vm160_vm0, %v133_v58 }
  0xa7   :  { %394 = vmatprep.mubr.msk.f32.mxu0 %vm160_vm0, %v134_v59 }
  0xaa   :  { %395 = vmatmul.mubr.msk.f32.gmra.mxu0 %vm160_vm0, %v135_v60 }
 0x166   :  { %v393_v63 = vpop.f32.mrf.mxu0 }
 0x167   :  { %v245_v6 = vadd.f32 %v393_v63, %v148_v4 }
 0x168   :  { %v239_v1 = vpop.f32.mrf.mxu0 }
 0x169   :  { %v240_v9 = vadd.f32 %v239_v1, %v143_v8 }
 0x16a   :  { %v396_v2 = vpop.f32.mrf.mxu0 }
 0x16b   :  { %v255_v3 = vadd.f32 %v396_v2, %v158_v62 }
 0x16c   :  { %v249_v5 = vpop.f32.mrf.mxu0 }
 0x16d   :  { %422 = vtanh.f32 %v255_v3  ;;  %v250_v7 = vadd.f32 %v249_v5, %v153_v0 }
 0x16f   :  { %424 = vtanh.f32 %v250_v7 }
 0x170   :  { %426 = vtanh.f32 %v245_v6 }
 0x171   :  { %428 = vtanh.f32 %v240_v9 }
 0x17a   :  { %v423_v10 = vpop.eup %422 }
 0x17b   :  { %398 = vmatpush3.msra.mxu1 %v423_v10 }
 0x17c   :  { %v425_v11 = vpop.eup %424  ;;  %399 = vmatprep.subr.mxu1 %v453_v61 }
 0x17d   :  { %400 = vmatpush3.msra.mxu1 %v425_v11  ;;  %v427_v12 = vpop.eup %426 }
 0x17e   :  { %401 = vmatprep.subr.mxu1 %v453_v61  ;;  %v429_v14 = vpop.eup %428 }
 0x17f   :  { %402 = vmatpush3.msra.mxu1 %v427_v12 }
 0x180   :  { %403 = vmatprep.subr.mxu1 %v453_v61 }
 0x181   :  { %404 = vmatpush3.msra.mxu1 %v429_v14 }
 0x182   :  { %406 = vmatmul.mubr.msk.f32.vlgmr.msra.gmra.mxu1 %vm160_vm0, %v262_v13 }
 0x242   :  { %v338_v16 = vpop.f32.mrf.mxu1 }
 0x243   :  { %v339_v17 = vadd.f32 %v338_v16, %v267_v15 }
 0x244   :  { %v407_v18 = vpop.f32.mrf.mxu1 }
 0x245   :  { %342 = vst [vmem:[#allocation2] sm:$0x3] %v339_v17 }
 0x24c   :  { %v343_v21 = vld [vmem:[#allocation2] sm:$0x1]  ;;  %v347_v22 = vld [vmem:[#allocation2 + $0x1] sm:$0x1] }
 0x24d   :  { %v345_v24 = vsub.f32 %v343_v21, %v344_v19  ;;  %v349_v26 = vadd.f32 %v348_v20, %v347_v22 }
 0x24f   :  { %346 = vst [vmem:[#allocation2] sm:$0x1] %v345_v24  ;;  %350 = vst [vmem:[#allocation2 + $0x1] sm:$0x1] %v349_v26 }
 0x250   :  { %441 = shalt.err (!%p438_p4)
}
 0x251   :  { %360 = dma.vmem_to_hbm [thread:$0]  %s358_s25, 32, %s597_s8, [#allocation3]  }
 0x252   :  { %450 = dma.done.wait [#allocation3], 32  }
 0x253   :  { %451 = vsyncadd [#allocation3], 4294967264 }
 0x254   :  { %364 = vsyncpa [#allocation3], 1 }

</bundles_post_ra>
